<compile_context>
chip_gen: v6e
topology: v6e:2x2x1
jax: 0.10.0
libtpu: 0.0.40
codegen_flags: <defaults>
</compile_context>

<pallas_src>
import functools

import jax
import jax.numpy as jnp
from jax.experimental import pallas as pl
from jax.experimental.pallas import tpu as pltpu


def predictor_kernel(x_ref, w_ref, b_ref, o_ref):
    # x_ref: (TB, E)   w_ref: (E, P*C)   b_ref: (1, P*C)   o_ref: (TB, P*C)
    y = jnp.dot(x_ref[...], w_ref[...], preferred_element_type=jnp.float32)
    o_ref[...] = (y + b_ref[...]).astype(o_ref.dtype)


def _pick_row_tile(bsz, e, pc, row_block, vmem_budget_bytes):
    """Largest row tile <= row_block whose double-buffered footprint fits."""
    if bsz <= row_block:
        return bsz  # single full-batch tile (block == full dim is always legal)
    tb = row_block
    # 2x double-buffered x tiles + 2x output tiles + resident weight/bias.
    def footprint(t):
        return 4 * (2 * t * e + 2 * t * pc + e * pc + pc)
    while tb > 256 and footprint(tb) > vmem_budget_bytes:
        tb //= 2
    return max(tb, 8)


def predictor_forward(params, x, *, predict_terms, row_block=1024):
    # Mirrors Predictor.forward / Predictor.nets: x must be (batch, encoding).
    assert x.ndim == 2, f"x.shape should be (batch, encoding) {x.shape}"
    w2d = params["w2d"]          # (E, P*C)  fused per-head weights (pre-packed)
    b2d = params["b2d"]          # (1, P*C)  fused per-head biases
    e, pc = w2d.shape
    assert pc % predict_terms == 0
    c = pc // predict_terms
    bsz = x.shape[0]

    # Keep the working set inside the smallest scoped-VMEM default (v5e: 16 MiB).
    tb = _pick_row_tile(bsz, e, pc, row_block, vmem_budget_bytes=14 << 20)
    grid = (pl.cdiv(bsz, tb),)

    cost = pl.CostEstimate(
        flops=2 * bsz * e * pc,
        transcendentals=0,
        bytes_accessed=4 * (bsz * e + e * pc + pc + bsz * pc),
    )

    out2d = pl.pallas_call(
        predictor_kernel,
        out_shape=jax.ShapeDtypeStruct((bsz, pc), x.dtype),
        grid_spec=pl.GridSpec(
            grid=grid,
            in_specs=[
                pl.BlockSpec((tb, e), lambda r: (r, 0)),    # x row tile
                pl.BlockSpec((e, pc), lambda r: (0, 0)),    # fused weights (resident)
                pl.BlockSpec((1, pc), lambda r: (0, 0)),    # fused bias    (resident)
            ],
            out_specs=pl.BlockSpec((tb, pc), lambda r: (r, 0)),
        ),
        compiler_params=pltpu.CompilerParams(
            dimension_semantics=("parallel",)),
        cost_estimate=cost,
    )(x, w2d, b2d)

    # (B, P*C) -> (B, P, C) -> (P, B, C): same layout as torch.stack([...], dim=0).
    return jnp.transpose(out2d.reshape(bsz, predict_terms, c), (1, 0, 2))


def init_params(key, encoding_size, code_size, predict_terms):
    # Equivalent of the lazy set_encoding_size(): predict_terms independent
    # nn.Linear(encoding_size, code_size) layers with PyTorch default init
    # U(-1/sqrt(E), 1/sqrt(E)).  Per-head weights W_p are (C, E) like torch;
    # they are fused ONCE here into w2d (E, P*C) / b2d (1, P*C) so the kernel
    # never repacks anything at call time.
    kw, kb = jax.random.split(key)
    bound = 1.0 / (encoding_size ** 0.5)
    w = jax.random.uniform(kw, (predict_terms, code_size, encoding_size),
                           jnp.float32, -bound, bound)        # (P, C, E)
    b = jax.random.uniform(kb, (predict_terms, code_size),
                           jnp.float32, -bound, bound)        # (P, C)

    # w2d[e, p*C + c] = W_p[c, e]  ->  column block p is head p's W^T.
    w2d = jnp.transpose(w, (2, 0, 1)).reshape(
        encoding_size, predict_terms * code_size)
    b2d = b.reshape(1, predict_terms * code_size)

    fused = {"w2d": w2d, "b2d": b2d}
    per_head = {"w": w, "b": b}        # kept only for the reference check
    return fused, per_head


if __name__ == "__main__":
    key = jax.random.PRNGKey(0)
    kx, kp = jax.random.split(key)

    batch, encoding_size = 8, 256
    code_size, predict_terms = 32, 4   # fused N = P*C = 128 (lane-dense)

    x = jax.random.normal(kx, (batch, encoding_size), jnp.float32)
    params, per_head = init_params(kp, encoding_size, code_size, predict_terms)

    fwd = jax.jit(functools.partial(predictor_forward,
                                    predict_terms=predict_terms))
    out = jax.block_until_ready(fwd(params, x))
    assert out.shape == (predict_terms, batch, code_size), out.shape

    # Cross-check against a plain-JAX reference of the same Predictor math
    # (stack of per-term nn.Linear(E, C) layers, torch layout W_p: (C, E)).
    ref = jnp.einsum("be,pce->pbc", x, per_head["w"]) + per_head["b"][:, None, :]
    assert jnp.allclose(out, ref, atol=1e-5, rtol=1e-5)

    print("KERNEL_OK")
</pallas_src>

<mosaic_0001>
module attributes {stable_mosaic.version = 11 : i64} {
  func.func @predictor_kernel(%arg0: i32, %arg1: memref<8x256xf32, #tpu.memory_space<vmem>>, %arg2: memref<256x128xf32, #tpu.memory_space<vmem>>, %arg3: memref<1x128xf32, #tpu.memory_space<vmem>>, %arg4: memref<8x128xf32, #tpu.memory_space<vmem>>) attributes {dimension_semantics = [#tpu.dimension_semantics<parallel>], iteration_bounds = array<i64: 1>, scalar_prefetch = 0 : i64, scratch_operands = 0 : i64, tpu.core_type = #tpu.core_type<tc>, window_params = [{transform_indices = @transform_0, window_bounds = array<i64: 8, 256>}, {pipeline_mode = #tpu.pipeline_mode<synchronous>, transform_indices = @transform_1, window_bounds = array<i64: 256, 128>}, {pipeline_mode = #tpu.pipeline_mode<synchronous>, transform_indices = @transform_2, window_bounds = array<i64: 1, 128>}, {transform_indices = @transform_3, window_bounds = array<i64: 8, 128>}]} {
    %c0 = arith.constant 0 : index
    %c0_0 = arith.constant 0 : index
    %0 = vector.load %arg1[%c0, %c0_0] : memref<8x256xf32, #tpu.memory_space<vmem>>, vector<8x256xf32>
    %c0_1 = arith.constant 0 : index
    %c0_2 = arith.constant 0 : index
    %1 = vector.load %arg2[%c0_1, %c0_2] : memref<256x128xf32, #tpu.memory_space<vmem>>, vector<256x128xf32>
    %cst = arith.constant dense<0.000000e+00> : vector<8x128xf32>
    %2 = tpu.matmul %0, %1, %cst {dimension_numbers = #tpu.dot_dimension_numbers<[1], [0], [0], [1], [0, 0, 1, 1], [], []>} : vector<8x256xf32>, vector<256x128xf32>, vector<8x128xf32> -> vector<8x128xf32>
    %c0_3 = arith.constant 0 : index
    %c0_4 = arith.constant 0 : index
    %3 = vector.load %arg3[%c0_3, %c0_4] : memref<1x128xf32, #tpu.memory_space<vmem>>, vector<1x128xf32>
    %4 = vector.broadcast %3 : vector<1x128xf32> to vector<8x128xf32>
    %5 = arith.addf %2, %4 : vector<8x128xf32>
    %c0_5 = arith.constant 0 : index
    %c0_6 = arith.constant 0 : index
    %6 = vector.load %arg4[%c0_5, %c0_6] : memref<8x128xf32, #tpu.memory_space<vmem>>, vector<8x128xf32>
    tpu.vector_store %arg4[%c0_5, %c0_6], %5 {strides = array<i32>} : memref<8x128xf32, #tpu.memory_space<vmem>>, vector<8x128xf32>,
    return
  }
  func.func @transform_0(%arg0: i32) -> (i32, i32) {
    %c0_i32 = arith.constant 0 : i32
    %c0_i32_0 = arith.constant 0 : i32
    return %arg0, %c0_i32 : i32, i32
  }
  func.func @transform_1(%arg0: i32) -> (i32, i32) {
    %c0_i32 = arith.constant 0 : i32
    %c0_i32_0 = arith.constant 0 : i32
    %c0_i32_1 = arith.constant 0 : i32
    return %c0_i32, %c0_i32_0 : i32, i32
  }
  func.func @transform_2(%arg0: i32) -> (i32, i32) {
    %c0_i32 = arith.constant 0 : i32
    %c0_i32_0 = arith.constant 0 : i32
    %c0_i32_1 = arith.constant 0 : i32
    return %c0_i32, %c0_i32_0 : i32, i32
  }
  func.func @transform_3(%arg0: i32) -> (i32, i32) {
    %c0_i32 = arith.constant 0 : i32
    %c0_i32_0 = arith.constant 0 : i32
    return %arg0, %c0_i32 : i32, i32
  }
}

</mosaic_0001>

<bundles_post_ra>
// kernel: predictor_forward.1
= control target key start
LH: loop header
LB: loop body
LE: loop exit
PB: predicated region body
PF: predicated region fallthrough
CT: control target
= control target key end

     0   :  { %8 = vsyncpa [#allocation3], 0  ;;  %s311_s0 = inlined_call_operand.hbm [shape: f32[8,256], index: 0, kind: input, shape index: {}]   ;;  %s312_s1 = inlined_call_operand.hbm [shape: f32[256,128], index: 1, kind: input, shape index: {}]   ;;  %s313_s2 = inlined_call_operand.hbm [shape: f32[1,128], index: 2, kind: input, shape index: {}]   ;;  %s314_s3 = inlined_call_operand.vmem [shape: f32[8,128], index: 3, kind: output, shape index: {}]  }
   0x1   :  { %9 = vsyncpa [#allocation5], 0  ;;  %s274_s12 = smov [#allocation4]  }
   0x2   :  { %s25_s13 = sshll.u32 %s274_s12, 4  ;;  %s26_s13 = int_to_ptr.vmem [resolvable:$true] %s25_s13 }
   0x3   :  { %s218_s14 = scalar_lea.vmem %s26_s13, 4096  ;;  %p223_p1 = scmp.lt.s32.totalorder %s26_s13, %s26_s13 }
   0x4   :  { %p219_p0 = scmp.ne.s32.totalorder %s26_s13, %s218_s14  ;;  %p224_p2 = scmp.lt.s32.totalorder %s218_s14, %s218_s14 }
   0x6   :  { %p225_p3 = por %p224_p2, %p223_p1 }
   0x8   :  { %p226_p4 = pnand %p225_p3, %p219_p0 }
   0xa   :  { %229 = shalt.err (!%p226_p4)
}
   0xb   :  { %s275_s15 = smov 128   ;;  %s276_s16 = smov 8  }
   0xc   :  { %31 = dma.hbm_to_vmem [thread:$0]  %s312_s1, 4096, %s26_s13, [#allocation5], %s275_s15, %s275_s15, %s276_s16  }
   0xd   :  { %s277_s19 = smov [#allocation2]   ;;  %s278_s21 = smov [#allocation6]  }
   0xe   :  { %s16_s20 = sshll.u32 %s277_s19, 4  ;;  %s38_s22 = sshll.u32 %s278_s21, 4  ;;  %s17_s20 = int_to_ptr.vmem [resolvable:$true] %s16_s20  ;;  %s39_s22 = int_to_ptr.vmem [resolvable:$true] %s38_s22 }
   0xf   :  { %s238_s23 = scalar_lea.vmem %s17_s20, 256  ;;  %p243_p6 = scmp.lt.s32.totalorder %s17_s20, %s17_s20 }
  0x10   :  { %p239_p5 = scmp.ne.s32.totalorder %s17_s20, %s238_s23  ;;  %p244_p7 = scmp.lt.s32.totalorder %s238_s23, %s238_s23 }
  0x12   :  { %p245_p8 = por %p244_p7, %p243_p6 }
  0x14   :  { %p246_p9 = pnand %p245_p8, %p239_p5 }
  0x16   :  { %249 = shalt.err (!%p246_p9)
}
  0x17   :  { %19 = dma.hbm_to_vmem [thread:$0]  %s311_s0, 256, %s17_s20, [#allocation3]  }
  0x18   :  { %s258_s26 = scalar_lea.vmem %s39_s22, 16  ;;  %s262_s1 = scalar_lea.vmem %s39_s22, 32 }
  0x19   :  { %p259_p10 = scmp.ne.s32.totalorder %s39_s22, %s258_s26  ;;  %p263_p11 = scmp.lt.s32.totalorder %s39_s22, %s39_s22 }
  0x1a   :  { %p264_p12 = scmp.lt.s32.totalorder %s262_s1, %s258_s26 }
  0x1c   :  { %p265_p13 = por %p264_p12, %p263_p11 }
  0x1e   :  { %p266_p0 = pnand %p265_p13, %p259_p10 }
  0x20   :  { %269 = shalt.err (!%p266_p0)
}
  0x21   :  { %41 = dma.hbm_to_vmem [thread:$0]  %s313_s2, 16, %s39_s22, [#allocation5]  }
  0x22   :  { %270 = dma.done.wait [#allocation3], 256  }
  0x23   :  { %271 = vsyncadd [#allocation3], 4294967040 }
  0x24   :  { %272 = dma.done.wait [#allocation5], 4112  }
  0x25   :  { %273 = vsyncadd [#allocation5], 4294963184  ;;  %v84_v0 = vld [vmem:[#allocation4 + $0xf8] sm:$0xff]  ;;  %v83_v2 = vld [vmem:[#allocation4 + $0xf0] sm:$0xff] }
  0x26   :  { %v68_v1 = vld [vmem:[#allocation4 + $0x78] sm:$0xff]  ;;  %170 = vmatprep.subr.mxu0 %v84_v0  ;;  %v67_v3 = vld [vmem:[#allocation4 + $0x70] sm:$0xff]  ;;  %v82_v4 = vld [vmem:[#allocation4 + $0xe8] sm:$0xff] }
  0x27   :  { %171 = vmatpush3.msra.mxu0 %v68_v1  ;;  %v66_v5 = vld [vmem:[#allocation4 + $0x68] sm:$0xff]  ;;  %v81_v6 = vld [vmem:[#allocation4 + $0xe0] sm:$0xff]  ;;  %v80_v8 = vld [vmem:[#allocation4 + $0xd8] sm:$0xff] }
  0x28   :  { %172 = vmatprep.subr.mxu0 %v83_v2  ;;  %v65_v7 = vld [vmem:[#allocation4 + $0x60] sm:$0xff]  ;;  %v64_v9 = vld [vmem:[#allocation4 + $0x58] sm:$0xff]  ;;  %v79_v10 = vld [vmem:[#allocation4 + $0xd0] sm:$0xff] }
  0x29   :  { %173 = vmatpush3.msra.mxu0 %v67_v3  ;;  %v63_v11 = vld [vmem:[#allocation4 + $0x50] sm:$0xff]  ;;  %v78_v12 = vld [vmem:[#allocation4 + $0xc8] sm:$0xff]  ;;  %v52_v13 = vld [vmem:[#allocation2 + $0x8] sm:$0xff] }
  0x2a   :  { %174 = vmatprep.subr.mxu0 %v82_v4  ;;  %v62_v14 = vld [vmem:[#allocation4 + $0x48] sm:$0xff]  ;;  %156 = vmatprep.mubr.f32.mxu0 %v52_v13  ;;  %v77_v15 = vld [vmem:[#allocation4 + $0xc0] sm:$0xff]  ;;  %v76_v17 = vld [vmem:[#allocation4 + $0xb8] sm:$0xff] }
  0x2b   :  { %175 = vmatpush3.msra.mxu0 %v66_v5  ;;  %v61_v16 = vld [vmem:[#allocation4 + $0x40] sm:$0xff]  ;;  %v60_v18 = vld [vmem:[#allocation4 + $0x38] sm:$0xff]  ;;  %v75_v19 = vld [vmem:[#allocation4 + $0xb0] sm:$0xff] }
  0x2c   :  { %176 = vmatprep.subr.mxu0 %v81_v6  ;;  %v59_v20 = vld [vmem:[#allocation4 + $0x30] sm:$0xff]  ;;  %v74_v21 = vld [vmem:[#allocation4 + $0xa8] sm:$0xff]  ;;  %v73_v23 = vld [vmem:[#allocation4 + $0xa0] sm:$0xff] }
  0x2d   :  { %177 = vmatpush3.msra.mxu0 %v65_v7  ;;  %v58_v22 = vld [vmem:[#allocation4 + $0x28] sm:$0xff]  ;;  %v57_v24 = vld [vmem:[#allocation4 + $0x20] sm:$0xff]  ;;  %v72_v25 = vld [vmem:[#allocation4 + $0x98] sm:$0xff] }
  0x2e   :  { %178 = vmatprep.subr.mxu0 %v80_v8  ;;  %v56_v26 = vld [vmem:[#allocation4 + $0x18] sm:$0xff]  ;;  %v71_v27 = vld [vmem:[#allocation4 + $0x90] sm:$0xff]  ;;  %v70_v29 = vld [vmem:[#allocation4 + $0x88] sm:$0xff] }
  0x2f   :  { %179 = vmatpush3.msra.mxu0 %v64_v9  ;;  %v55_v28 = vld [vmem:[#allocation4 + $0x10] sm:$0xff]  ;;  %v54_v30 = vld [vmem:[#allocation4 + $0x8] sm:$0xff]  ;;  %v69_v31 = vld [vmem:[#allocation4 + $0x80] sm:$0xff] }
  0x30   :  { %180 = vmatprep.subr.mxu0 %v79_v10  ;;  %v53_v32 = vld [vmem:[#allocation4] sm:$0xff]  ;;  %v51_v33 = vld [vmem:[#allocation2] sm:$0xff] }
  0x31   :  { %181 = vmatpush3.msra.mxu0 %v63_v11  ;;  %v169_v35 = vld [vmem:[#allocation6] ss:$0 sm:$0xff] }
  0x32   :  { %182 = vmatprep.subr.mxu0 %v78_v12 }
  0x33   :  { %183 = vmatpush3.msra.mxu0 %v62_v14 }
  0x34   :  { %184 = vmatprep.subr.mxu0 %v77_v15 }
  0x35   :  { %185 = vmatpush3.msra.mxu0 %v61_v16 }
  0x36   :  { %186 = vmatprep.subr.mxu0 %v76_v17 }
  0x37   :  { %187 = vmatpush3.msra.mxu0 %v60_v18 }
  0x38   :  { %188 = vmatprep.subr.mxu0 %v75_v19 }
  0x39   :  { %189 = vmatpush3.msra.mxu0 %v59_v20 }
  0x3a   :  { %190 = vmatprep.subr.mxu0 %v74_v21 }
  0x3b   :  { %191 = vmatpush3.msra.mxu0 %v58_v22 }
  0x3c   :  { %192 = vmatprep.subr.mxu0 %v73_v23 }
  0x3d   :  { %193 = vmatpush3.msra.mxu0 %v57_v24 }
  0x3e   :  { %194 = vmatprep.subr.mxu0 %v72_v25 }
  0x3f   :  { %195 = vmatpush3.msra.mxu0 %v56_v26 }
  0x40   :  { %196 = vmatprep.subr.mxu0 %v71_v27 }
  0x41   :  { %197 = vmatpush3.msra.mxu0 %v55_v28 }
  0x42   :  { %198 = vmatprep.subr.mxu0 %v70_v29 }
  0x43   :  { %199 = vmatpush3.msra.mxu0 %v54_v30 }
  0x44   :  { %200 = vmatprep.subr.mxu0 %v69_v31 }
  0x45   :  { %201 = vmatpush3.msra.mxu0 %v53_v32 }
  0x46   :  { %157 = vmatmul.mubr.f32.vlgmr.msra.gmra.mxu0 %v51_v33 }
 0x106   :  { %v202_v34 = vpop.f32.mrf.mxu0 }
 0x108   :  { %v203_v36 = vpop.f32.mrf.mxu0 }
 0x109   :  { %v204_v37 = vadd.f32 %v203_v36, %v202_v34 }
 0x10b   :  { %v159_v38 = vadd.f32 %v204_v37, %v169_v35 }
 0x10d   :  { %162 = vst [vmem:[%s314_s3] sm:$0xff] %v159_v38 }
 0x10e   :  { %167 = vsyncpa [#allocation3], 1 }
 0x10f   :  { %168 = vsyncpa [#allocation5], 1 }

</bundles_post_ra>
